<compile_context>
chip_gen: v6e
topology: v6e:2x2x1
jax: 0.10.0
libtpu: 0.0.40
codegen_flags: <defaults>
</compile_context>

<pallas_src>
import math

import jax
import jax.numpy as jnp
from jax.experimental import pallas as pl
from jax.experimental.pallas import tpu as pltpu

_LANE = 128
_MIB = 1024 * 1024


# --------------------------------------------------------------------------
# Kernel body (elementwise: activation(x + x))
# --------------------------------------------------------------------------
def _apply_activation(y, activation):
    if activation == "relu":
        return jnp.maximum(y, 0)
    if activation == "leaky_relu":
        return jnp.where(y >= 0, y, 0.01 * y)
    if activation == "selu":
        alpha = 1.6732632423543772
        scale = 1.0507009873554805
        yf = y.astype(jnp.float32)
        yf = scale * jnp.where(yf > 0, yf, alpha * (jnp.exp(yf) - 1.0))
        return yf.astype(y.dtype)
    if activation == "none":
        return y
    raise ValueError(f"unknown activation: {activation!r}")


def _make_kernel(activation):
    def kernel(x_ref, o_ref):
        x = x_ref[...]
        o_ref[...] = _apply_activation(x + x, activation)
    return kernel


# --------------------------------------------------------------------------
# Layout / tiling helpers
# --------------------------------------------------------------------------
def _round_up(a, b):
    return ((a + b - 1) // b) * b


def _min_sublanes(itemsize):
    # packed sublane minimum: 8 (f32), 16 (bf16/f16), 32 (int8/fp8)
    return max(8, 32 // max(itemsize, 1))


def _vmem_budget():
    """(per-tile target bytes, vmem_limit_bytes) tuned per TPU generation."""
    cap = None
    try:
        cap = pltpu.get_tpu_info().vmem_capacity_bytes
    except Exception:
        cap = None
    if cap is not None and cap <= 64 * _MIB:
        # v7x-class: 64 MiB VMEM, ~3.2 TB/s HBM -> bigger tiles amortize the
        # ~0.35 us per-grid-step cost; 4 double-buffered 8 MiB tiles = 32 MiB.
        return 8 * _MIB, 48 * _MIB
    # v5e / v6e (128 MiB physical VMEM): 4 MiB tiles -> 16 MiB in flight; the
    # explicit 32 MiB limit also lifts v5e's 16 MiB default scoped limit.
    return 4 * _MIB, 32 * _MIB


def _fast_width(total, min_sub):
    """Widest lane-dense last dim that needs no padding at all."""
    for width in (1024, 512, 256, 128):
        if total % (width * min_sub) == 0:
            return width
    return None


def _pick_block_rows(rows, min_sub, target_rows):
    """Rows per tile (rows is a multiple of min_sub).

    Prefers (a) a divisor of rows -> no masked boundary tile, (b) >=2 grid
    steps with an even count (v7x megacore sharding / balance), (c) the
    largest tile that fits the per-tile byte target.
    """
    units = rows // min_sub
    cap_units = max(1, min(target_rows // min_sub, units))
    if units >= 2:
        cap_units = min(cap_units, max(1, units // 2))  # force >=2 grid steps
    best_any = None
    best_even = None
    for d in range(cap_units, 0, -1):
        if units % d == 0:
            if best_any is None:
                best_any = d
            if (units // d) % 2 == 0:
                best_even = d
                break
    d = best_any if best_any is not None else cap_units
    if best_even is not None and 2 * best_even >= d:
        d = best_even                       # even grid unless it halves tiles
    if 2 * d < cap_units:
        d = cap_units                       # exact tiling too costly: accept a
                                            # masked boundary tile instead
    return d * min_sub


def _stream_2d(x2d, block_rows, activation, vmem_limit):
    rows, width = x2d.shape
    grid = pl.cdiv(rows, block_rows)
    return pl.pallas_call(
        _make_kernel(activation),
        out_shape=jax.ShapeDtypeStruct((rows, width), x2d.dtype),
        grid=(grid,),
        in_specs=[pl.BlockSpec((block_rows, width), lambda i: (i, 0))],
        out_specs=pl.BlockSpec((block_rows, width), lambda i: (i, 0)),
        compiler_params=pltpu.CompilerParams(
            dimension_semantics=("parallel",),
            vmem_limit_bytes=vmem_limit,
        ),
    )(x2d)


def _single_block(x2d, activation, vmem_limit):
    r, c = x2d.shape
    return pl.pallas_call(
        _make_kernel(activation),
        out_shape=jax.ShapeDtypeStruct((r, c), x2d.dtype),
        grid=(1,),
        in_specs=[pl.BlockSpec((r, c), lambda i: (0, 0))],
        out_specs=pl.BlockSpec((r, c), lambda i: (0, 0)),
        compiler_params=pltpu.CompilerParams(
            dimension_semantics=("arbitrary",),
            vmem_limit_bytes=vmem_limit,
        ),
    )(x2d)


def _ragged_lane_collapse(shape, itemsize, min_sub, tile_bytes):
    """Absorb trailing dims into the lane axis while a min_sub-row block still
    fits in one tile.  Returns (rows, lanes)."""
    total = math.prod(shape)
    c = 1
    for d in reversed(shape):
        if c * d * itemsize * min_sub <= tile_bytes:
            c *= d
        else:
            break
    return total // c, c


def _residual_block_padded(x, activation, tile_bytes, vmem_limit):
    """Last-resort path for pathological shapes: pad flat, stream, slice."""
    # TODO(synk): could avoid the pad/slice round trips with manual flat DMA.
    shape = x.shape
    itemsize = x.dtype.itemsize
    min_sub = _min_sublanes(itemsize)
    total = x.size
    width = 1024 if total * itemsize >= 4 * _MIB else _LANE
    padded_total = _round_up(total, width * min_sub)
    x_flat = jnp.pad(jnp.ravel(x), (0, padded_total - total))
    rows = padded_total // width
    target_rows = max(min_sub, tile_bytes // (width * itemsize))
    block_rows = _pick_block_rows(rows, min_sub, target_rows)
    out2d = _stream_2d(x_flat.reshape(rows, width), block_rows,
                       activation, vmem_limit)
    return out2d.reshape(-1)[:total].reshape(shape)


def _residual_block_ragged(x, activation, tile_bytes, vmem_limit):
    """Sizes not divisible by width*min_sub: no padding, no post-slice."""
    shape = x.shape
    itemsize = x.dtype.itemsize
    min_sub = _min_sublanes(itemsize)
    total = x.size

    # Small tensors: single full block over the natural (leading, last) view.
    r, c = total // shape[-1], shape[-1]
    padded_block_bytes = (_round_up(r, min_sub) * _round_up(c, _LANE) * itemsize)
    if padded_block_bytes <= tile_bytes:
        return _single_block(x.reshape(r, c), activation, vmem_limit).reshape(shape)

    # Larger tensors: collapse trailing dims into a dense lane axis and tile
    # rows; the final (partial) tile is handled by Pallas boundary masking.
    rr, cc = _ragged_lane_collapse(shape, itemsize, min_sub, tile_bytes)
    if cc >= _LANE and rr >= min_sub:
        block_rows = max(min_sub,
                         (tile_bytes // (cc * itemsize)) // min_sub * min_sub)
        block_rows = min(block_rows, (rr // min_sub) * min_sub)
        out2d = _stream_2d(x.reshape(rr, cc), block_rows, activation, vmem_limit)
        return out2d.reshape(shape)

    return _residual_block_padded(x, activation, tile_bytes, vmem_limit)


# --------------------------------------------------------------------------
# Public entry point
# --------------------------------------------------------------------------
def residual_block(x, in_channels=None, out_channels=None, activation="relu"):
    """Forward of ResidualBlock: activation(blocks(x) + shortcut(x)) = activation(2*x).

    blocks and shortcut are both nn.Identity() in the reference module, so the
    result does not depend on in_channels/out_channels.
    """
    del in_channels, out_channels  # shortcut is Identity either way
    if x.ndim == 0 or x.size == 0:
        return _apply_activation(x + x, activation)

    shape = x.shape
    total = x.size
    itemsize = x.dtype.itemsize
    min_sub = _min_sublanes(itemsize)
    tile_bytes, vmem_limit = _vmem_budget()

    width = _fast_width(total, min_sub)
    if width is not None:
        rows = total // width                      # multiple of min_sub
        target_rows = max(min_sub, tile_bytes // (width * itemsize))
        block_rows = _pick_block_rows(rows, min_sub, target_rows)
        out2d = _stream_2d(x.reshape(rows, width), block_rows,
                           activation, vmem_limit)
        return out2d.reshape(shape)

    return _residual_block_ragged(x, activation, tile_bytes, vmem_limit)


if __name__ == "__main__":
    key = jax.random.PRNGKey(0)

    # Primary example: NCHW input matching PyTorch conv conventions.
    x = jax.random.normal(key, (2, 4, 16, 16), dtype=jnp.float32)
    out = jax.block_until_ready(
        residual_block(x, in_channels=4, out_channels=4, activation="relu"))
    ref = jnp.maximum(x + x, 0.0)
    assert out.shape == x.shape and out.dtype == x.dtype
    assert jnp.allclose(out, ref, atol=1e-6), "mismatch vs reference (f32)"

    # Extra coverage:
    #  - ragged size            -> small single-block ragged path (no pad/slice)
    #  - larger aligned tensor  -> multi-step (even) grid on the fast path
    #  - bf16                   -> packed-dtype sublane minimum (16)
    #  - larger ragged tensor   -> row-tiled ragged path (masked boundary tile)
    for shape, dt in [((3, 5, 7, 9), jnp.float32),
                      ((16, 16, 64, 64), jnp.float32),
                      ((2, 4, 16, 16), jnp.bfloat16),
                      ((8, 3, 250, 250), jnp.float32)]:
        xi = jax.random.normal(jax.random.PRNGKey(1), shape, dtype=dt)
        oi = jax.block_until_ready(residual_block(xi, activation="relu"))
        ri = jnp.maximum(xi + xi, jnp.zeros_like(xi))
        assert oi.shape == xi.shape and oi.dtype == xi.dtype
        assert jnp.allclose(oi.astype(jnp.float32), ri.astype(jnp.float32),
                            atol=1e-6), f"mismatch vs reference {shape} {dt}"

    # Non-default activation path (leaky_relu) on a tiny tensor.
    xl = jax.random.normal(key, (2, 4, 16, 16), dtype=jnp.float32)
    ol = jax.block_until_ready(residual_block(xl, activation="leaky_relu"))
    rl = jnp.where(2 * xl >= 0, 2 * xl, 0.01 * (2 * xl))
    assert jnp.allclose(ol, rl, atol=1e-6), "mismatch vs reference (leaky_relu)"

    print("KERNEL_OK")
</pallas_src>

<mosaic_0001>
module attributes {stable_mosaic.version = 11 : i64} {
  func.func @kernel(%arg0: i32, %arg1: memref<8x256xf32, #tpu.memory_space<vmem>>, %arg2: memref<8x256xf32, #tpu.memory_space<vmem>>) attributes {dimension_semantics = [#tpu.dimension_semantics<parallel>], iteration_bounds = array<i64: 1>, scalar_prefetch = 0 : i64, scratch_operands = 0 : i64, tpu.core_type = #tpu.core_type<tc>, window_params = [{transform_indices = @transform_0, window_bounds = array<i64: 8, 256>}, {transform_indices = @transform_1, window_bounds = array<i64: 8, 256>}]} {
    %c0 = arith.constant 0 : index
    %c0_0 = arith.constant 0 : index
    %0 = vector.load %arg1[%c0, %c0_0] : memref<8x256xf32, #tpu.memory_space<vmem>>, vector<8x256xf32>
    %1 = arith.addf %0, %0 : vector<8x256xf32>
    %cst = arith.constant 0.000000e+00 : f32
    %2 = vector.broadcast %cst : f32 to vector<8x256xf32>
    %3 = arith.maximumf %1, %2 : vector<8x256xf32>
    %c0_1 = arith.constant 0 : index
    %c0_2 = arith.constant 0 : index
    %4 = vector.load %arg2[%c0_1, %c0_2] : memref<8x256xf32, #tpu.memory_space<vmem>>, vector<8x256xf32>
    tpu.vector_store %arg2[%c0_1, %c0_2], %3 {strides = array<i32>} : memref<8x256xf32, #tpu.memory_space<vmem>>, vector<8x256xf32>,
    return
  }
  func.func @transform_0(%arg0: i32) -> (i32, i32) {
    %c0_i32 = arith.constant 0 : i32
    %c0_i32_0 = arith.constant 0 : i32
    return %arg0, %c0_i32 : i32, i32
  }
  func.func @transform_1(%arg0: i32) -> (i32, i32) {
    %c0_i32 = arith.constant 0 : i32
    %c0_i32_0 = arith.constant 0 : i32
    return %arg0, %c0_i32 : i32, i32
  }
}

</mosaic_0001>

<bundles_post_ra>
// kernel: tpu_custom_call.1
= control target key start
LH: loop header
LB: loop body
LE: loop exit
PB: predicated region body
PF: predicated region fallthrough
CT: control target
= control target key end

     0   :  { %6 = vsyncpa [#allocation3], 0  ;;  %s108_s0 = inlined_call_operand.hbm [shape: f32[8,256], index: 0, kind: input, shape index: {}]   ;;  %s109_s1 = inlined_call_operand.hbm [shape: f32[8,256], index: 1, kind: output, shape index: {}]  }
   0x1   :  { %7 = vsyncpa [#allocation4], 0  ;;  %s90_s6 = smov [#allocation2]  }
   0x2   :  { %s14_s7 = sshll.u32 %s90_s6, 4  ;;  %s15_s7 = int_to_ptr.vmem [resolvable:$true] %s14_s7 }
   0x3   :  { %s54_s8 = scalar_lea.vmem %s15_s7, 256  ;;  %p59_p1 = scmp.lt.s32.totalorder %s15_s7, %s15_s7 }
   0x4   :  { %p55_p0 = scmp.ne.s32.totalorder %s15_s7, %s54_s8  ;;  %p60_p2 = scmp.lt.s32.totalorder %s54_s8, %s54_s8 }
   0x6   :  { %p61_p3 = por %p60_p2, %p59_p1 }
   0x8   :  { %p62_p4 = pnand %p61_p3, %p55_p0 }
   0xa   :  { %65 = shalt.err (!%p62_p4)
}
   0xb   :  { %17 = dma.hbm_to_vmem [thread:$0]  %s108_s0, 256, %s15_s7, [#allocation3]  }
   0xc   :  { %86 = dma.done.wait [#allocation3], 256  }
   0xd   :  { %87 = vsyncadd [#allocation3], 4294967040  ;;  %v21_v0 = vld [vmem:[#allocation2] sm:$0xff]  ;;  %v22_v1 = vld [vmem:[#allocation2 + $0x8] sm:$0xff]  ;;  %s91_s11 = smov [#allocation5]  }
   0xe   :  { %s35_s12 = sshll.u32 %s91_s11, 4  ;;  %v23_v2 = vadd.f32 %v21_v0, %v21_v0  ;;  %v24_v3 = vadd.f32 %v22_v1, %v22_v1  ;;  %s36_s12 = int_to_ptr.vmem [resolvable:$true] %s35_s12 }
   0xf   :  { %s66_s13 = scalar_lea.vmem %s36_s12, 256  ;;  %p71_p6 = scmp.lt.s32.totalorder %s36_s12, %s36_s12 }
  0x10   :  { %v25_v4 = vmax.f32 %v23_v2, 0.0  ;;  %v26_v5 = vmax.f32 %v24_v3, 0.0  ;;  %p67_p5 = scmp.ne.s32.totalorder %s36_s12, %s66_s13  ;;  %p72_p7 = scmp.lt.s32.totalorder %s66_s13, %s66_s13 }
  0x12   :  { %27 = vst [vmem:[#allocation5] sm:$0xff] %v25_v4  ;;  %28 = vst [vmem:[#allocation5 + $0x8] sm:$0xff] %v26_v5  ;;  %p73_p8 = por %p72_p7, %p71_p6 }
  0x14   :  { %p74_p9 = pnand %p73_p8, %p67_p5 }
  0x16   :  { %77 = shalt.err (!%p74_p9)
}
  0x17   :  { %38 = dma.vmem_to_hbm [thread:$0]  %s36_s12, 256, %s109_s1, [#allocation4]  }
  0x18   :  { %88 = dma.done.wait [#allocation4], 256  }
  0x19   :  { %89 = vsyncadd [#allocation4], 4294967040 }
  0x1a   :  { %42 = vsyncpa [#allocation3], 1 }
  0x1b   :  { %43 = vsyncpa [#allocation4], 1 }

</bundles_post_ra>
